<compile_context>
chip_gen: v7x
topology: tpu7x:2x2x1
jax: 0.10.0
libtpu: 0.0.40
codegen_flags: <defaults>
</compile_context>

<pallas_src>
import functools

import jax
import jax.numpy as jnp
from jax.experimental import pallas as pl
from jax.experimental.pallas import tpu as pltpu

_LANE = 128
_SUBLANE = 16                       # bf16 sublane packing
_TK_CAP = 32768


def _round_up(x, m):
    return (x + m - 1) // m * m


def _cdiv(a, b):
    return (a + b - 1) // b


def _derive_vmem_limit():
    """Generation-aware scoped-VMEM request (derived from hardware, not hard-coded)."""
    cap = 0
    try:
        info = pltpu.get_tpu_info()
        cap = int(getattr(info, "vmem_capacity_bytes", 0) or 0)
    except Exception:
        cap = 0
    if cap <= 0:
        cap = 64 * 1024 * 1024                        # conservative (v7x-sized) default
    if cap <= 64 * 1024 * 1024:                       # v7x-class: 64 MiB physical VMEM
        return min(3 * cap // 4, 44 * 1024 * 1024)
    return min(3 * cap // 4, 96 * 1024 * 1024)        # v5e / v6e: 128 MiB physical VMEM


_VMEM_LIMIT = _derive_vmem_limit()


def _pick_tiles(f, bm, bn, vmem_limit, tk_cap=_TK_CAP):
    """K tiling: kt tiles of width tk (multiple of 128) covering round_up(f,128)
    with < 128 columns of slop per tile (review fix for the tk/f_pad rounding)."""
    f128 = _round_up(max(int(f), 1), _LANE)
    per_tk = 2 * 2 * bm + 2 * 2 * bn          # double-buffered bf16 x & W bytes per K col
    resident = 3 * bm * bn * 4                # f32 acc + resident / double-buffered out
    avail = max(vmem_limit // 2 - resident, _LANE * per_tk)
    tk_max = max(_LANE, min((avail // per_tk) // _LANE * _LANE, tk_cap))
    kt = _cdiv(f128, tk_max)
    tk = _round_up(_cdiv(f128, kt), _LANE)
    return tk, kt, tk * kt


def _pick_row_block(bs_pad):
    if bs_pad <= 256 or bs_pad % 256:
        return bs_pad
    return 256


def _pick_col_block(c_pad):
    for cand in (512, 256, 128):
        if c_pad % cand == 0:
            return cand
    return c_pad


# ----------------------------------------------------------------------------
# Padded-activation wrapper carried between Pallas layers.
# ----------------------------------------------------------------------------
class _Act:
    """Lane/sublane padded activation (bs_pad, n_pad); padded columns are zero."""

    def __init__(self, data, bs, n):
        self.data = data
        self.bs = int(bs)
        self.n = int(n)

    def unpad(self):
        return self.data[:self.bs, :self.n].astype(jnp.float32)


def _to_array(v):
    if isinstance(v, _Act):
        return v.unpad()
    return v


def _detach(v):
    if isinstance(v, _Act):
        return _Act(jax.lax.stop_gradient(v.data), v.bs, v.n)
    return jax.lax.stop_gradient(v)


# ----------------------------------------------------------------------------
# Fused dense layer kernels: Y = [relu](X @ W + b); f32 MXU accumulation.
# ----------------------------------------------------------------------------
def _linear_kernel_single(x_ref, w_ref, b_ref, o_ref, *, relu):
    y = jnp.dot(x_ref[...], w_ref[...], preferred_element_type=jnp.float32) + b_ref[...]
    if relu:
        y = jnp.maximum(y, 0.0)
    o_ref[...] = y.astype(o_ref.dtype)


def _linear_kernel_acc(x_ref, w_ref, b_ref, o_ref, acc_ref, *, relu):
    k = pl.program_id(2)

    @pl.when(k == 0)
    def _():
        acc_ref[...] = jnp.zeros_like(acc_ref)

    acc_ref[...] += jnp.dot(x_ref[...], w_ref[...], preferred_element_type=jnp.float32)

    @pl.when(k == pl.num_programs(2) - 1)
    def _():
        y = acc_ref[...] + b_ref[...]
        if relu:
            y = jnp.maximum(y, 0.0)
        o_ref[...] = y.astype(o_ref.dtype)


@functools.partial(jax.jit, static_argnames=("relu", "bm", "bn", "tk"))
def _linear_padded_call(xp, wp, bp, *, relu, bm, bn, tk):
    bs_pad, f_pad = xp.shape
    c_pad = wp.shape[1]
    kt = f_pad // tk
    if kt == 1:
        kernel = functools.partial(_linear_kernel_single, relu=relu)
        scratch = ()
    else:
        kernel = functools.partial(_linear_kernel_acc, relu=relu)
        scratch = (pltpu.VMEM((bm, bn), jnp.float32),)
    return pl.pallas_call(
        kernel,
        out_shape=jax.ShapeDtypeStruct((bs_pad, c_pad), jnp.bfloat16),
        grid_spec=pltpu.PrefetchScalarGridSpec(
            num_scalar_prefetch=0,
            grid=(bs_pad // bm, c_pad // bn, kt),
            in_specs=[
                pl.BlockSpec((bm, tk), lambda i, j, k: (i, k)),
                pl.BlockSpec((tk, bn), lambda i, j, k: (k, j)),
                pl.BlockSpec((1, bn), lambda i, j, k: (0, j)),
            ],
            out_specs=pl.BlockSpec((bm, bn), lambda i, j, k: (i, j)),
            scratch_shapes=scratch,
        ),
        compiler_params=pltpu.CompilerParams(
            dimension_semantics=("parallel", "parallel", "arbitrary"),
            vmem_limit_bytes=_VMEM_LIMIT,
        ),
    )(xp, wp, bp)


class PallasLinear:
    """Dense layer (flatten -> x @ W + b [-> relu]) backed by the Pallas kernel.
    Produces / consumes padded bf16 activations (_Act): no slice / re-pad HBM
    round trips between consecutive Pallas layers."""

    def __init__(self, in_features, out_features, key, relu=True):
        kw, kb = jax.random.split(key)
        bound = 1.0 / (in_features ** 0.5)
        self.w = jax.random.uniform(kw, (in_features, out_features),
                                    jnp.float32, -bound, bound)
        self.b = jax.random.uniform(kb, (out_features,), jnp.float32, -bound, bound)
        self.relu = relu
        self.in_features = in_features
        self.out_features = out_features
        self._wcache = {}            # (f_pad, c_pad) -> padded (W, b), built once

    def _padded_params(self, f_pad, c_pad):
        key = (f_pad, c_pad)
        if key not in self._wcache:
            wp = jnp.pad(self.w.astype(jnp.bfloat16),
                         ((0, f_pad - self.in_features),
                          (0, c_pad - self.out_features)))
            bp = jnp.pad(self.b.astype(jnp.float32),
                         (0, c_pad - self.out_features)).reshape(1, c_pad)
            self._wcache[key] = (wp, bp)
        return self._wcache[key]

    def __call__(self, x):
        if isinstance(x, _Act):
            assert x.n == self.in_features, "feature mismatch"
            bs = x.bs
            bs_pad = x.data.shape[0]
            xp = x.data
            if xp.dtype != jnp.bfloat16:
                xp = xp.astype(jnp.bfloat16)
        else:
            x2 = jnp.asarray(x)
            bs = x2.shape[0]
            x2 = x2.reshape(bs, -1)                            # x.view(bs, -1)
            assert x2.shape[1] == self.in_features, "feature mismatch"
            bs16 = _round_up(bs, _SUBLANE)
            bs_pad = bs16 if bs16 <= 256 else _round_up(bs, 256)
            f128 = _round_up(self.in_features, _LANE)
            xp = jnp.pad(x2.astype(jnp.bfloat16),
                         ((0, bs_pad - bs), (0, f128 - self.in_features)))

        bm = _pick_row_block(bs_pad)
        c_pad = _round_up(self.out_features, _LANE)
        bn = _pick_col_block(c_pad)
        tk, _, f_pad = _pick_tiles(self.in_features, bm, bn, _VMEM_LIMIT)
        if xp.shape[1] < f_pad:
            xp = jnp.pad(xp, ((0, 0), (0, f_pad - xp.shape[1])))

        wp, bp = self._padded_params(f_pad, c_pad)
        out = _linear_padded_call(xp, wp, bp, relu=self.relu, bm=bm, bn=bn, tk=tk)
        return _Act(out, bs, self.out_features)


# ----------------------------------------------------------------------------
# Log-softmax kernel on the padded logits block (EUP epilogue work).
# ----------------------------------------------------------------------------
def _log_softmax_kernel(x_ref, o_ref, *, num_valid):
    x = x_ref[...].astype(jnp.float32)
    col = jax.lax.broadcasted_iota(jnp.int32, x.shape, 1)
    masked = jnp.where(col < num_valid, x, jnp.float32(-1e30))
    m = jnp.max(masked, axis=-1, keepdims=True)
    lse = m + jnp.log(jnp.sum(jnp.exp(masked - m), axis=-1, keepdims=True))
    o_ref[...] = x - lse


@functools.partial(jax.jit, static_argnames=("num_valid", "bm"))
def _log_softmax_padded_call(xp, *, num_valid, bm):
    bs_pad, c_pad = xp.shape
    return pl.pallas_call(
        functools.partial(_log_softmax_kernel, num_valid=num_valid),
        out_shape=jax.ShapeDtypeStruct((bs_pad, c_pad), jnp.float32),
        grid_spec=pltpu.PrefetchScalarGridSpec(
            num_scalar_prefetch=0,
            grid=(bs_pad // bm,),
            in_specs=[pl.BlockSpec((bm, c_pad), lambda i: (i, 0))],
            out_specs=pl.BlockSpec((bm, c_pad), lambda i: (i, 0)),
        ),
        compiler_params=pltpu.CompilerParams(
            dimension_semantics=("parallel",),
            vmem_limit_bytes=_VMEM_LIMIT,
        ),
    )(xp)


class PallasLogSoftmax:
    """Row-wise log-softmax directly on the padded logits block.  Kept as its
    own layer so the container's 'logits = output of layer len-2' semantics
    are preserved (full fusion into the head would hide the raw logits)."""

    def __call__(self, x):
        if isinstance(x, _Act):
            bm = _pick_row_block(x.data.shape[0])
            out = _log_softmax_padded_call(x.data, num_valid=x.n, bm=bm)
            return _Act(out, x.bs, x.n)
        x2 = jnp.asarray(x).astype(jnp.float32)
        bs, n = x2.shape
        bs_pad = _round_up(bs, _SUBLANE)
        c_pad = _round_up(n, _LANE)
        xp = jnp.pad(x2, ((0, bs_pad - bs), (0, c_pad - n)))
        out = _log_softmax_padded_call(xp, num_valid=n, bm=_pick_row_block(bs_pad))
        return out[:bs, :n]


# ----------------------------------------------------------------------------
# Fused multi-layer probe kernel: per-layer logits + mean cross-entropy.
# Grid axis 0 = probe layer ("parallel"); axis 1 = feature tile ("arbitrary").
# Per-layer K-tile counts arrive via scalar prefetch; steps beyond a layer's
# true F are skipped (matmul) and their DMA is elided (clamped block index).
# ----------------------------------------------------------------------------
def _fused_probe_kernel(kt_ref, x_ref, w_ref, b_ref, tgt_ref, logits_ref, loss_ref,
                        *, num_classes, batch_size):
    l = pl.program_id(0)
    k = pl.program_id(1)
    kt_l = kt_ref[l]

    @pl.when(k == 0)
    def _():
        logits_ref[...] = jnp.zeros_like(logits_ref)

    @pl.when(k < kt_l)                        # skip K tiles beyond this layer's true F
    def _():
        logits_ref[...] += jnp.dot(x_ref[...], w_ref[...],
                                   preferred_element_type=jnp.float32)

    @pl.when(k == pl.num_programs(1) - 1)
    def _():
        logits = logits_ref[...] + b_ref[...]             # (bs_pad, c_pad) f32
        logits_ref[...] = logits

        bs_pad, c_pad = logits.shape
        col = jax.lax.broadcasted_iota(jnp.int32, (bs_pad, c_pad), 1)
        masked = jnp.where(col < num_classes, logits, jnp.float32(-1e30))
        m = jnp.max(masked, axis=-1, keepdims=True)
        lse = m + jnp.log(jnp.sum(jnp.exp(masked - m), axis=-1, keepdims=True))

        tgt = tgt_ref[...]                                 # (bs_pad, 1) int32
        tgt_logit = jnp.sum(jnp.where(col == tgt, logits, 0.0),
                            axis=-1, keepdims=True)
        per_row = lse - tgt_logit                          # (bs_pad, 1)
        row = jax.lax.broadcasted_iota(jnp.int32, (bs_pad, 1), 0)
        per_row = jnp.where(row < batch_size, per_row, 0.0)   # drop padded rows
        loss = jnp.sum(per_row) * jnp.float32(1.0 / batch_size)
        loss_ref[...] = loss * jnp.ones((1, _LANE), jnp.float32)   # lane-dense store


@functools.partial(jax.jit, static_argnames=("num_classes", "batch_size", "tk"))
def _fused_probe_call(kt_arr, x_stack, w_stack, b_stack, tgt, *,
                      num_classes, batch_size, tk):
    num_layers, bs_pad, f_pad = x_stack.shape
    c_pad = w_stack.shape[2]
    kt_grid = f_pad // tk

    kernel = functools.partial(_fused_probe_kernel,
                               num_classes=num_classes, batch_size=batch_size)
    return pl.pallas_call(
        kernel,
        out_shape=(
            jax.ShapeDtypeStruct((num_layers, bs_pad, c_pad), jnp.float32),
            jax.ShapeDtypeStruct((num_layers, 1, _LANE), jnp.float32),
        ),
        grid_spec=pltpu.PrefetchScalarGridSpec(
            num_scalar_prefetch=1,
            grid=(num_layers, kt_grid),
            in_specs=[
                pl.BlockSpec((None, bs_pad, tk),
                             lambda l, k, kt_ref: (l, 0, jnp.minimum(k, kt_ref[l] - 1))),
                pl.BlockSpec((None, tk, c_pad),
                             lambda l, k, kt_ref: (l, jnp.minimum(k, kt_ref[l] - 1), 0)),
                pl.BlockSpec((None, 1, c_pad), lambda l, k, kt_ref: (l, 0, 0)),
                pl.BlockSpec((bs_pad, 1), lambda l, k, kt_ref: (0, 0)),
            ],
            out_specs=(
                pl.BlockSpec((None, bs_pad, c_pad), lambda l, k, kt_ref: (l, 0, 0)),
                pl.BlockSpec((None, 1, _LANE), lambda l, k, kt_ref: (l, 0, 0)),
            ),
        ),
        compiler_params=pltpu.CompilerParams(
            dimension_semantics=("parallel", "arbitrary"),
            vmem_limit_bytes=_VMEM_LIMIT,
        ),
    )(kt_arr, x_stack, w_stack, b_stack, tgt)


# ----------------------------------------------------------------------------
# Module-level wrappers mirroring the PyTorch classes.
# ----------------------------------------------------------------------------
class Sequential_SplitNN:
    """JAX/Pallas port of the PyTorch Sequential_SplitNN container (forward only)."""

    def __init__(self, split_train, split_config, split_measure_config,
                 local_module_num, layers=()):
        self.split_train = split_train
        self.split_config = split_config
        self.split_measure_config = split_measure_config
        self.local_module_num = local_module_num
        self._layers = list(layers)
        if self.split_train:
            for module_index, layer_index in enumerate(self.split_config):
                pass   # mirrors the original no-op initialization loop

    def add_layer(self, layer):
        self._layers.append(layer)

    def forward(self, *x, get_logits=False):
        logits = None
        for layer_index, layer in enumerate(self._layers):
            if isinstance(x, tuple):
                x = layer(*x)
            else:
                x = layer(x)
            if layer_index == len(self._layers) - 2:
                logits = x
        if get_logits:
            return (_to_array(x), _to_array(logits))
        return _to_array(x)

    def forward_measure(self, x):
        hidden_xs = {}
        for layer_index, module in enumerate(self._layers):
            if isinstance(x, tuple):
                x = module(*x)
            else:
                x = module(x)
            if layer_index in self.split_measure_config:
                x = _detach(x)                              # x.detach()
                hidden_xs[layer_index] = x
        return (_to_array(x), hidden_xs)


class LinearProbesPallas:
    """Per-layer linear probes + mean cross-entropy over the measured hidden
    activations; all probes execute in a single fused, layer-parallel
    pallas_call, with per-layer K-tile counts supplied via scalar prefetch."""

    def __init__(self):
        self.probes = {}
        self._stack_cache = {}         # padded weight/bias stacks, built once

    def add(self, layer_index, hidden_features, num_of_classes, key):
        kw, kb = jax.random.split(key)
        bound = 1.0 / (hidden_features ** 0.5)
        w = jax.random.uniform(kw, (hidden_features, num_of_classes),
                               jnp.float32, -bound, bound)
        b = jax.random.uniform(kb, (num_of_classes,), jnp.float32, -bound, bound)
        self.probes[str(layer_index)] = (w, b)

    def forward(self, img, hidden_xs, target):
        # TODO(synk): loss_ixy.backward() (probe-parameter gradient update) is
        # training-side state mutation; only forward logits/losses are computed.
        bs = img.shape[0]
        keys, xs, fs, ws, bls = [], [], [], [], []
        bs_pad = _round_up(bs, _SUBLANE)
        for layer_index, x in hidden_xs.items():
            w, b = self.probes[str(layer_index)]
            keys.append(str(layer_index))
            if isinstance(x, _Act):
                xd = jax.lax.stop_gradient(x.data)          # already padded bf16
                if xd.dtype != jnp.bfloat16:
                    xd = xd.astype(jnp.bfloat16)
                f_true = x.n
                bs_pad = max(bs_pad, xd.shape[0])
            else:
                xd = jax.lax.stop_gradient(jnp.asarray(x)).reshape(bs, -1)
                f_true = xd.shape[1]
                xd = xd.astype(jnp.bfloat16)
            xs.append(xd)
            fs.append(f_true)
            ws.append(w)
            bls.append(b)

        num_classes = ws[0].shape[1]
        assert all(w.shape[1] == num_classes for w in ws)
        c_pad = _round_up(num_classes, _LANE)

        f128s = [_round_up(f, _LANE) for f in fs]
        # Cap tk so small probes can actually skip whole K tiles while the
        # largest probe still needs at most ~16 K steps.
        tk_cap = max(min(f128s), _round_up(_cdiv(max(f128s), 16), _LANE))
        tk, _, f_pad = _pick_tiles(max(f128s), bs_pad, c_pad, _VMEM_LIMIT,
                                   tk_cap=tk_cap)
        kt_arr = jnp.asarray([_cdiv(f128, tk) for f128 in f128s], jnp.int32)

        # One zero-pad + stack into the (L, bs_pad, f_pad) layout (inputs are
        # already bf16 and row-padded when coming from the Pallas layers).
        x_stack = jnp.stack([
            jnp.pad(xd, ((0, bs_pad - xd.shape[0]), (0, f_pad - xd.shape[1])))
            for xd in xs])

        # Probe weights / biases are static: build padded stacks once & cache.
        cache_key = (tuple(keys), f_pad, c_pad)
        if cache_key not in self._stack_cache:
            w_stack = jnp.stack([
                jnp.pad(w.astype(jnp.bfloat16),
                        ((0, f_pad - w.shape[0]), (0, c_pad - num_classes)))
                for w in ws])
            b_stack = jnp.stack([
                jnp.pad(b.astype(jnp.float32),
                        (0, c_pad - num_classes)).reshape(1, c_pad)
                for b in bls])
            self._stack_cache[cache_key] = (w_stack, b_stack)
        w_stack, b_stack = self._stack_cache[cache_key]

        tgt = jnp.pad(target.astype(jnp.int32), (0, bs_pad - bs)).reshape(bs_pad, 1)

        logits_pad, loss_pad = _fused_probe_call(
            kt_arr, x_stack, w_stack, b_stack, tgt,
            num_classes=num_classes, batch_size=bs, tk=tk)

        loss_host = jax.device_get(loss_pad[:, 0, 0])   # single host sync, post-launch
        logits_list = [logits_pad[i, :bs, :num_classes] for i in range(len(xs))]
        return logits_list, [float(v) for v in loss_host]


# ----------------------------------------------------------------------------
if __name__ == "__main__":
    key = jax.random.PRNGKey(0)
    k_img, k_t, k0, k1, k2, kp0, kp1 = jax.random.split(key, 7)

    batch, num_classes = 2, 10
    img = jax.random.normal(k_img, (batch, 4, 16, 16), jnp.float32)   # NCHW
    target = jax.random.randint(k_t, (batch,), 0, num_classes)

    layers = [
        PallasLinear(4 * 16 * 16, 256, k0, relu=True),
        PallasLinear(256, 64, k1, relu=True),
        PallasLinear(64, num_classes, k2, relu=False),     # class-logit head
        PallasLogSoftmax(),                                # final layer
    ]
    model = Sequential_SplitNN(split_train=False, split_config=[],
                               split_measure_config=[0, 1],
                               local_module_num=1, layers=layers)

    out, logits = model.forward(img, get_logits=True)
    out_m, hidden_xs = model.forward_measure(img)

    probes = LinearProbesPallas()
    probes.add(0, 256, num_classes, kp0)
    probes.add(1, 64, num_classes, kp1)
    h_logits, loss_ixys = probes.forward(img, hidden_xs, target)

    jax.block_until_ready(out)
    jax.block_until_ready(logits)
    for lg in h_logits:
        jax.block_until_ready(lg)

    # ---- validation against plain-JAX references --------------------------
    def ref_linear(x_in, layer):
        xb = x_in.reshape(x_in.shape[0], -1).astype(jnp.bfloat16).astype(jnp.float32)
        wb = layer.w.astype(jnp.bfloat16).astype(jnp.float32)
        y = xb @ wb + layer.b
        if layer.relu:
            y = jnp.maximum(y, 0.0)
        return y.astype(jnp.bfloat16).astype(jnp.float32)   # kernel outputs bf16

    h_act = img
    h_ref = img.reshape(batch, -1)
    for layer in layers[:3]:
        out_act = layer(h_act)
        got = out_act.unpad()
        ref = ref_linear(h_ref, layer)
        assert jnp.allclose(got, ref, atol=3e-3, rtol=3e-3), "linear layer mismatch"
        h_act = out_act
        h_ref = got

    assert jnp.allclose(logits, h_ref, atol=2e-3, rtol=2e-3), "get_logits mismatch"
    assert jnp.allclose(out, jax.nn.log_softmax(logits, axis=-1), atol=1e-4), \
        "log-softmax output mismatch"
    assert jnp.allclose(out, out_m, atol=1e-5), "forward vs forward_measure mismatch"
    assert set(hidden_xs.keys()) == {0, 1}, "split_measure_config keys mismatch"

    for i, layer_index in enumerate(hidden_xs.keys()):
        act = hidden_xs[layer_index]
        x_flat = act.unpad() if isinstance(act, _Act) else \
            jnp.asarray(act).reshape(batch, -1)
        w, b = probes.probes[str(layer_index)]
        xb = x_flat.astype(jnp.bfloat16).astype(jnp.float32)
        wb = w.astype(jnp.bfloat16).astype(jnp.float32)
        ref_logits = xb @ wb + b
        lse = jax.scipy.special.logsumexp(ref_logits, axis=-1)
        tl = jnp.take_along_axis(ref_logits, target[:, None], axis=-1)[:, 0]
        ref_loss = float(jnp.mean(lse - tl))
        assert jnp.allclose(h_logits[i], ref_logits, atol=3e-3, rtol=3e-3), \
            "probe logits mismatch"
        assert abs(loss_ixys[i] - ref_loss) < 5e-3, "probe loss mismatch"

    print("KERNEL_OK")
</pallas_src>

<mosaic_0001>
module attributes {stable_mosaic.version = 11 : i64} {
  func.func @_linear_kernel_single(%arg0: i32, %arg1: i32, %arg2: i32, %arg3: memref<16x1024xbf16, #tpu.memory_space<vmem>>, %arg4: memref<1024x256xbf16, #tpu.memory_space<vmem>>, %arg5: memref<1x256xf32, #tpu.memory_space<vmem>>, %arg6: memref<16x256xbf16, #tpu.memory_space<vmem>>) attributes {dimension_semantics = [#tpu.dimension_semantics<parallel>, #tpu.dimension_semantics<parallel>, #tpu.dimension_semantics<arbitrary>], iteration_bounds = array<i64: 1, 1, 1>, scalar_prefetch = 0 : i64, scratch_operands = 0 : i64, tpu.core_type = #tpu.core_type<tc>, window_params = [{transform_indices = @transform_0, window_bounds = array<i64: 16, 1024>}, {transform_indices = @transform_1, window_bounds = array<i64: 1024, 256>}, {transform_indices = @transform_2, window_bounds = array<i64: 1, 256>}, {transform_indices = @transform_3, window_bounds = array<i64: 16, 256>}]} {
    %c0 = arith.constant 0 : index
    %c0_0 = arith.constant 0 : index
    %0 = vector.load %arg3[%c0, %c0_0] : memref<16x1024xbf16, #tpu.memory_space<vmem>>, vector<16x1024xbf16>
    %c0_1 = arith.constant 0 : index
    %c0_2 = arith.constant 0 : index
    %1 = vector.load %arg4[%c0_1, %c0_2] : memref<1024x256xbf16, #tpu.memory_space<vmem>>, vector<1024x256xbf16>
    %cst = arith.constant dense<0.000000e+00> : vector<16x256xf32>
    %2 = tpu.matmul %0, %1, %cst {dimension_numbers = #tpu.dot_dimension_numbers<[1], [0], [0], [1], [0, 0, 1, 1], [], []>} : vector<16x1024xbf16>, vector<1024x256xbf16>, vector<16x256xf32> -> vector<16x256xf32>
    %c0_3 = arith.constant 0 : index
    %c0_4 = arith.constant 0 : index
    %3 = vector.load %arg5[%c0_3, %c0_4] : memref<1x256xf32, #tpu.memory_space<vmem>>, vector<1x256xf32>
    %4 = vector.broadcast %3 : vector<1x256xf32> to vector<16x256xf32>
    %5 = arith.addf %2, %4 : vector<16x256xf32>
    %cst_5 = arith.constant 0.000000e+00 : f32
    %6 = vector.broadcast %cst_5 : f32 to vector<16x256xf32>
    %7 = arith.maximumf %5, %6 : vector<16x256xf32>
    %8 = arith.truncf %7 : vector<16x256xf32> to vector<16x256xbf16>
    %c0_6 = arith.constant 0 : index
    %c0_7 = arith.constant 0 : index
    %9 = vector.load %arg6[%c0_6, %c0_7] : memref<16x256xbf16, #tpu.memory_space<vmem>>, vector<16x256xbf16>
    tpu.vector_store %arg6[%c0_6, %c0_7], %8 {strides = array<i32>} : memref<16x256xbf16, #tpu.memory_space<vmem>>, vector<16x256xbf16>,
    return
  }
  func.func @transform_0(%arg0: i32, %arg1: i32, %arg2: i32) -> (i32, i32) {
    %c0_i32 = arith.constant 0 : i32
    return %arg0, %arg2 : i32, i32
  }
  func.func @transform_1(%arg0: i32, %arg1: i32, %arg2: i32) -> (i32, i32) {
    %c0_i32 = arith.constant 0 : i32
    return %arg2, %arg1 : i32, i32
  }
  func.func @transform_2(%arg0: i32, %arg1: i32, %arg2: i32) -> (i32, i32) {
    %c0_i32 = arith.constant 0 : i32
    %c0_i32_0 = arith.constant 0 : i32
    return %c0_i32, %arg1 : i32, i32
  }
  func.func @transform_3(%arg0: i32, %arg1: i32, %arg2: i32) -> (i32, i32) {
    %c0_i32 = arith.constant 0 : i32
    return %arg0, %arg1 : i32, i32
  }
}

</mosaic_0001>

<bundles_post_ra>
// kernel: _linear_padded_call.1
= control target key start
LH: loop header
LB: loop body
LE: loop exit
PB: predicated region body
PF: predicated region fallthrough
CT: control target
= control target key end

     0   :  { %8 = vsyncpa [#allocation3], 0  ;;  %s1594_s0 = inlined_call_operand.hbm [shape: bf16[16,1024], index: 0, kind: input, shape index: {}]   ;;  %s1595_s1 = inlined_call_operand.hbm [shape: bf16[1024,256], index: 1, kind: input, shape index: {}]   ;;  %s1596_s2 = inlined_call_operand.vmem [shape: f32[1,256], index: 2, kind: input, shape index: {}]   ;;  %s1597_s3 = inlined_call_operand.hbm [shape: bf16[16,256], index: 3, kind: output, shape index: {}]  }
   0x1   :  { %9 = vsyncpa [#allocation6], 0 }
   0x2   :  { %10 = vsyncpa [#allocation4], 0  ;;  %s1506_s12 = smov [#allocation2]   ;;  %s1434_s16 = scalar_lea.hbm %s1594_s0, 1024 }
   0x3   :  { %s16_s13 = sshll.u32 %s1506_s12, 4  ;;  %p1435_p0 = scmp.ne.s32.totalorder %s1594_s0, %s1434_s16  ;;  %s17_s13 = int_to_ptr.vmem [resolvable:$true] %s16_s13 }
   0x4   :  { %p1438_p1 = scmp.lt.u32.totalorder %s1434_s16, %s1594_s0 }
   0x6   :  { %p1440_p2 = pnand %p1438_p1, %p1435_p0 }
   0x8   :  { %1443 = shalt.err (!%p1440_p2)
}
   0x9   :  { %s1444_s21 = scalar_lea.vmem %s17_s13, 1024  ;;  %p1449_p4 = scmp.lt.s32.totalorder %s17_s13, %s17_s13 }
   0xa   :  { %p1445_p3 = scmp.ne.s32.totalorder %s17_s13, %s1444_s21  ;;  %p1450_p5 = scmp.lt.s32.totalorder %s1444_s21, %s1444_s21 }
   0xc   :  { %p1451_p6 = por %p1450_p5, %p1449_p4 }
   0xe   :  { %p1452_p7 = pnand %p1451_p6, %p1445_p3 }
  0x10   :  { %1455 = shalt.err (!%p1452_p7)
}
  0x11   :  { %s1507_s22 = smov 512   ;;  %s1508_s23 = smov 32  }
  0x12   :  { %22 = dma.hbm_to_vmem [thread:$0]  %s1594_s0, 1024, %s17_s13, [#allocation3], %s1507_s22, %s1507_s22, %s1508_s23  }
  0x13   :  { %s1509_s26 = smov [#allocation5]   ;;  %s1456_s30 = scalar_lea.hbm %s1595_s1, 16384 }
  0x14   :  { %s28_s27 = sshll.u32 %s1509_s26, 4  ;;  %p1457_p8 = scmp.ne.s32.totalorder %s1595_s1, %s1456_s30  ;;  %s29_s27 = int_to_ptr.vmem [resolvable:$true] %s28_s27 }
  0x15   :  { %p1460_p9 = scmp.lt.u32.totalorder %s1456_s30, %s1595_s1 }
  0x17   :  { %p1462_p10 = pnand %p1460_p9, %p1457_p8 }
  0x19   :  { %1465 = shalt.err (!%p1462_p10)
}
  0x1a   :  { %s1466_s8 = scalar_lea.vmem %s29_s27, 16384  ;;  %p1471_p12 = scmp.lt.s32.totalorder %s29_s27, %s29_s27 }
  0x1b   :  { %p1467_p11 = scmp.ne.s32.totalorder %s29_s27, %s1466_s8  ;;  %p1472_p13 = scmp.lt.s32.totalorder %s1466_s8, %s1466_s8 }
  0x1d   :  { %p1473_p0 = por %p1472_p13, %p1471_p12 }
  0x1f   :  { %p1474_p1 = pnand %p1473_p0, %p1467_p11 }
  0x21   :  { %1477 = shalt.err (!%p1474_p1)
}
  0x22   :  { %s1510_s0 = smov 128   ;;  %s1511_s9 = smov 8  }
  0x23   :  { %34 = dma.hbm_to_vmem [thread:$0]  %s1595_s1, 16384, %s29_s27, [#allocation6], %s1510_s0, %s1510_s0, %s1511_s9  }
  0x24   :  { %1500 = dma.done.wait [#allocation3], 1024  }
  0x25   :  { %1501 = vsyncadd [#allocation3], 4294966272 }
  0x26   :  { %1502 = dma.done.wait [#allocation6], 16384  }
  0x27   :  { %1503 = vsyncadd [#allocation6], 4294950912  ;;  %v1242_v0 = vld [vmem:[#allocation5 + $0x4] ss:$8 sps:$4 sm:$0xff]   ;;  %v1246_v2 = vld [vmem:[#allocation5] ss:$8 sps:$4 sm:$0xff]  }
  0x28   :  { %v1244_v1 = vld [vmem:[#allocation5 + $0x204] ss:$8 sps:$4 sm:$0xff]   ;;  %871 = vmatprep.subr.bf16.mxu1 %v1242_v0  ;;  %v1247_v3 = vld [vmem:[#allocation5 + $0x200] ss:$8 sps:$4 sm:$0xff]   ;;  %v1248_v4 = vld [vmem:[#allocation5 + $0x14] ss:$8 sps:$4 sm:$0xff]  }
  0x29   :  { %957 = vmatprep.subr.bf16.mxu0 %v1244_v1  ;;  %872 = vmatpush1.bf16.msra.mxu1 %v1246_v2  ;;  %v1250_v5 = vld [vmem:[#allocation5 + $0x214] ss:$8 sps:$4 sm:$0xff]   ;;  %v1252_v6 = vld [vmem:[#allocation5 + $0x10] ss:$8 sps:$4 sm:$0xff]   ;;  %v1254_v8 = vld [vmem:[#allocation5 + $0x24] ss:$8 sps:$4 sm:$0xff]  }
  0x2a   :  { %958 = vmatpush1.bf16.msra.mxu0 %v1247_v3  ;;  %873 = vmatprep.subr.bf16.mxu1 %v1248_v4  ;;  %v1253_v7 = vld [vmem:[#allocation5 + $0x210] ss:$8 sps:$4 sm:$0xff]   ;;  %v1256_v9 = vld [vmem:[#allocation5 + $0x224] ss:$8 sps:$4 sm:$0xff]   ;;  %v1258_v10 = vld [vmem:[#allocation5 + $0x20] ss:$8 sps:$4 sm:$0xff]  }
  0x2b   :  { %959 = vmatprep.subr.bf16.mxu0 %v1250_v5  ;;  %v1259_v11 = vld [vmem:[#allocation5 + $0x220] ss:$8 sps:$4 sm:$0xff]   ;;  %v1260_v12 = vld [vmem:[#allocation5 + $0x34] ss:$8 sps:$4 sm:$0xff]   ;;  %v1264_v14 = vld [vmem:[#allocation5 + $0x30] ss:$8 sps:$4 sm:$0xff]  }
  0x2c   :  { %v1262_v13 = vld [vmem:[#allocation5 + $0x234] ss:$8 sps:$4 sm:$0xff]   ;;  %v1265_v15 = vld [vmem:[#allocation5 + $0x230] ss:$8 sps:$4 sm:$0xff]   ;;  %v1266_v16 = vld [vmem:[#allocation5 + $0x44] ss:$8 sps:$4 sm:$0xff]  }
  0x2d   :  { %874 = vmatpush1.bf16.msra.mxu1 %v1252_v6  ;;  %v1268_v17 = vld [vmem:[#allocation5 + $0x244] ss:$8 sps:$4 sm:$0xff]   ;;  %v1270_v18 = vld [vmem:[#allocation5 + $0x40] ss:$8 sps:$4 sm:$0xff]   ;;  %v1272_v20 = vld [vmem:[#allocation5 + $0x54] ss:$8 sps:$4 sm:$0xff]  }
  0x2e   :  { %960 = vmatpush1.bf16.msra.mxu0 %v1253_v7  ;;  %875 = vmatprep.subr.bf16.mxu1 %v1254_v8  ;;  %v1271_v19 = vld [vmem:[#allocation5 + $0x240] ss:$8 sps:$4 sm:$0xff]   ;;  %v1274_v21 = vld [vmem:[#allocation5 + $0x254] ss:$8 sps:$4 sm:$0xff]   ;;  %v1276_v22 = vld [vmem:[#allocation5 + $0x50] ss:$8 sps:$4 sm:$0xff]  }
  0x2f   :  { %961 = vmatprep.subr.bf16.mxu0 %v1256_v9  ;;  %v1277_v23 = vld [vmem:[#allocation5 + $0x250] ss:$8 sps:$4 sm:$0xff]   ;;  %v1278_v24 = vld [vmem:[#allocation5 + $0x64] ss:$8 sps:$4 sm:$0xff]   ;;  %v1282_v26 = vld [vmem:[#allocation5 + $0x60] ss:$8 sps:$4 sm:$0xff]  }
  0x30   :  { %v1280_v25 = vld [vmem:[#allocation5 + $0x264] ss:$8 sps:$4 sm:$0xff]   ;;  %v1283_v27 = vld [vmem:[#allocation5 + $0x260] ss:$8 sps:$4 sm:$0xff]   ;;  %v1284_v28 = vld [vmem:[#allocation5 + $0x74] ss:$8 sps:$4 sm:$0xff]  }
  0x31   :  { %876 = vmatpush1.bf16.msra.mxu1 %v1258_v10  ;;  %v1286_v29 = vld [vmem:[#allocation5 + $0x274] ss:$8 sps:$4 sm:$0xff]   ;;  %v1288_v30 = vld [vmem:[#allocation5 + $0x70] ss:$8 sps:$4 sm:$0xff]   ;;  %v1290_v32 = vld [vmem:[#allocation5 + $0x84] ss:$8 sps:$4 sm:$0xff]  }
  0x32   :  { %962 = vmatpush1.bf16.msra.mxu0 %v1259_v11  ;;  %877 = vmatprep.subr.bf16.mxu1 %v1260_v12  ;;  %v1289_v31 = vld [vmem:[#allocation5 + $0x270] ss:$8 sps:$4 sm:$0xff]   ;;  %v1292_v33 = vld [vmem:[#allocation5 + $0x284] ss:$8 sps:$4 sm:$0xff]   ;;  %v1294_v34 = vld [vmem:[#allocation5 + $0x80] ss:$8 sps:$4 sm:$0xff]  }
  0x33   :  { %963 = vmatprep.subr.bf16.mxu0 %v1262_v13  ;;  %v1295_v35 = vld [vmem:[#allocation5 + $0x280] ss:$8 sps:$4 sm:$0xff]   ;;  %v1296_v36 = vld [vmem:[#allocation5 + $0x94] ss:$8 sps:$4 sm:$0xff]   ;;  %v1300_v38 = vld [vmem:[#allocation5 + $0x90] ss:$8 sps:$4 sm:$0xff]  }
  0x34   :  { %v1298_v37 = vld [vmem:[#allocation5 + $0x294] ss:$8 sps:$4 sm:$0xff]   ;;  %v1301_v39 = vld [vmem:[#allocation5 + $0x290] ss:$8 sps:$4 sm:$0xff]   ;;  %v1302_v40 = vld [vmem:[#allocation5 + $0xa4] ss:$8 sps:$4 sm:$0xff]  }
  0x35   :  { %878 = vmatpush1.bf16.msra.mxu1 %v1264_v14  ;;  %v1304_v41 = vld [vmem:[#allocation5 + $0x2a4] ss:$8 sps:$4 sm:$0xff]   ;;  %v1306_v42 = vld [vmem:[#allocation5 + $0xa0] ss:$8 sps:$4 sm:$0xff]   ;;  %v1308_v44 = vld [vmem:[#allocation5 + $0xb4] ss:$8 sps:$4 sm:$0xff]  }
  0x36   :  { %964 = vmatpush1.bf16.msra.mxu0 %v1265_v15  ;;  %879 = vmatprep.subr.bf16.mxu1 %v1266_v16  ;;  %v1307_v43 = vld [vmem:[#allocation5 + $0x2a0] ss:$8 sps:$4 sm:$0xff]   ;;  %v1310_v45 = vld [vmem:[#allocation5 + $0x2b4] ss:$8 sps:$4 sm:$0xff]   ;;  %v1312_v46 = vld [vmem:[#allocation5 + $0xb0] ss:$8 sps:$4 sm:$0xff]  }
  0x37   :  { %965 = vmatprep.subr.bf16.mxu0 %v1268_v17  ;;  %v1313_v47 = vld [vmem:[#allocation5 + $0x2b0] ss:$8 sps:$4 sm:$0xff]   ;;  %v43_v48 = vld [vmem:[#allocation2] sm:$0xff]  ;;  %v1320_v58 = vld [vmem:[#allocation5 + $0xd4] ss:$8 sps:$4 sm:$0xff]  }
  0x38   :  { %v47_v49 = vld [vmem:[#allocation2 + $0x20] sm:$0xff]  ;;  %v45_v53 = vld [vmem:[#allocation2 + $0x10] sm:$0xff] }
  0x39   :  { %880 = vmatpush1.bf16.msra.mxu1 %v1270_v18  ;;  %v1314_v50 = vld [vmem:[#allocation5 + $0xc4] ss:$8 sps:$4 sm:$0xff]   ;;  %v1080_v52 = vcombine.high %v43_v48, %v47_v49  ;;  %v49_v54 = vld [vmem:[#allocation2 + $0x30] sm:$0xff]  ;;  %v1318_v56 = vld [vmem:[#allocation5 + $0xc0] ss:$8 sps:$4 sm:$0xff]   ;;  %v1079_v8 = vcombine.low %v43_v48, %v47_v49 }
  0x3a   :  { %966 = vmatpush1.bf16.msra.mxu0 %v1271_v19  ;;  %881 = vmatprep.subr.bf16.mxu1 %v1272_v20  ;;  %v1316_v51 = vld [vmem:[#allocation5 + $0x2c4] ss:$8 sps:$4 sm:$0xff]   ;;  %v1084_v55 = vcombine.high %v45_v53, %v49_v54  ;;  %v1319_v57 = vld [vmem:[#allocation5 + $0x2c0] ss:$8 sps:$4 sm:$0xff]   ;;  %v1322_v59 = vld [vmem:[#allocation5 + $0x2d4] ss:$8 sps:$4 sm:$0xff]   ;;  %v1083_v10 = vcombine.low %v45_v53, %v49_v54 }
  0x3b   :  { %967 = vmatprep.subr.bf16.mxu0 %v1274_v21  ;;  %903 = vmatprep.mubr.bf16.mxu1 %v1080_v52  ;;  %v1324_v60 = vld [vmem:[#allocation5 + $0xd0] ss:$8 sps:$4 sm:$0xff]   ;;  %v1326_v62 = vld [vmem:[#allocation5 + $0xe4] ss:$8 sps:$4 sm:$0xff]   ;;  %v1330_v0 = vld [vmem:[#allocation5 + $0xe0] ss:$8 sps:$4 sm:$0xff]  }
  0x3c   :  { %989 = vmatprep.mubr.bf16.mxu0 %v1084_v55  ;;  %v1325_v61 = vld [vmem:[#allocation5 + $0x2d0] ss:$8 sps:$4 sm:$0xff]   ;;  %v1328_v63 = vld [vmem:[#allocation5 + $0x2e4] ss:$8 sps:$4 sm:$0xff]   ;;  %v1331_v1 = vld [vmem:[#allocation5 + $0x2e0] ss:$8 sps:$4 sm:$0xff]  }
  0x3d   :  { %882 = vmatpush1.bf16.msra.mxu1 %v1276_v22  ;;  %v1332_v2 = vld [vmem:[#allocation5 + $0xf4] ss:$8 sps:$4 sm:$0xff]   ;;  %v1336_v4 = vld [vmem:[#allocation5 + $0xf0] ss:$8 sps:$4 sm:$0xff]   ;;  %v1340_v6 = vld [vmem:[#allocation5 + $0x104] ss:$8 sps:$4 sm:$0xff]  }
  0x3e   :  { %968 = vmatpush1.bf16.msra.mxu0 %v1277_v23  ;;  %883 = vmatprep.subr.bf16.mxu1 %v1278_v24  ;;  %v1334_v3 = vld [vmem:[#allocation5 + $0x2f4] ss:$8 sps:$4 sm:$0xff]   ;;  %v1337_v5 = vld [vmem:[#allocation5 + $0x2f0] ss:$8 sps:$4 sm:$0xff]   ;;  %v1343_v7 = vld [vmem:[#allocation5 + $0x304] ss:$8 sps:$4 sm:$0xff]  }
  0x3f   :  { %969 = vmatprep.subr.bf16.mxu0 %v1280_v25  ;;  %v1338_v9 = vld [vmem:[#allocation5 + $0x100] ss:$8 sps:$4 sm:$0xff]   ;;  %v1346_v12 = vld [vmem:[#allocation5 + $0x114] ss:$8 sps:$4 sm:$0xff]   ;;  %v1344_v14 = vld [vmem:[#allocation5 + $0x110] ss:$8 sps:$4 sm:$0xff]  }
  0x40   :  { %v1341_v11 = vld [vmem:[#allocation5 + $0x300] ss:$8 sps:$4 sm:$0xff]   ;;  %v1349_v13 = vld [vmem:[#allocation5 + $0x314] ss:$8 sps:$4 sm:$0xff]   ;;  %v1347_v15 = vld [vmem:[#allocation5 + $0x310] ss:$8 sps:$4 sm:$0xff]  }
  0x41   :  { %884 = vmatpush1.bf16.msra.mxu1 %v1282_v26  ;;  %v1352_v16 = vld [vmem:[#allocation5 + $0x124] ss:$8 sps:$4 sm:$0xff]   ;;  %v1350_v18 = vld [vmem:[#allocation5 + $0x120] ss:$8 sps:$4 sm:$0xff]   ;;  %v1358_v20 = vld [vmem:[#allocation5 + $0x134] ss:$8 sps:$4 sm:$0xff]  }
  0x42   :  { %970 = vmatpush1.bf16.msra.mxu0 %v1283_v27  ;;  %885 = vmatprep.subr.bf16.mxu1 %v1284_v28  ;;  %v1355_v17 = vld [vmem:[#allocation5 + $0x324] ss:$8 sps:$4 sm:$0xff]   ;;  %v1353_v19 = vld [vmem:[#allocation5 + $0x320] ss:$8 sps:$4 sm:$0xff]   ;;  %v1361_v21 = vld [vmem:[#allocation5 + $0x334] ss:$8 sps:$4 sm:$0xff]  }
  0x43   :  { %971 = vmatprep.subr.bf16.mxu0 %v1286_v29  ;;  %v1356_v22 = vld [vmem:[#allocation5 + $0x130] ss:$8 sps:$4 sm:$0xff]   ;;  %v1364_v24 = vld [vmem:[#allocation5 + $0x144] ss:$8 sps:$4 sm:$0xff]   ;;  %v1362_v26 = vld [vmem:[#allocation5 + $0x140] ss:$8 sps:$4 sm:$0xff]  }
  0x44   :  { %v1359_v23 = vld [vmem:[#allocation5 + $0x330] ss:$8 sps:$4 sm:$0xff]   ;;  %v1367_v25 = vld [vmem:[#allocation5 + $0x344] ss:$8 sps:$4 sm:$0xff]   ;;  %v1365_v27 = vld [vmem:[#allocation5 + $0x340] ss:$8 sps:$4 sm:$0xff]  }
  0x45   :  { %886 = vmatpush1.bf16.msra.mxu1 %v1288_v30  ;;  %v1370_v28 = vld [vmem:[#allocation5 + $0x154] ss:$8 sps:$4 sm:$0xff]   ;;  %v1368_v30 = vld [vmem:[#allocation5 + $0x150] ss:$8 sps:$4 sm:$0xff]   ;;  %v1386_v48 = vld [vmem:[#allocation5 + $0x180] ss:$8 sps:$4 sm:$0xff]  }
  0x46   :  { %972 = vmatpush1.bf16.msra.mxu0 %v1289_v31  ;;  %887 = vmatprep.subr.bf16.mxu1 %v1290_v32  ;;  %v1373_v29 = vld [vmem:[#allocation5 + $0x354] ss:$8 sps:$4 sm:$0xff]   ;;  %v1371_v31 = vld [vmem:[#allocation5 + $0x350] ss:$8 sps:$4 sm:$0xff]   ;;  %v1376_v32 = vld [vmem:[#allocation5 + $0x164] ss:$8 sps:$4 sm:$0xff]  }
  0x47   :  { %973 = vmatprep.subr.bf16.mxu0 %v1292_v33  ;;  %v1379_v33 = vld [vmem:[#allocation5 + $0x364] ss:$8 sps:$4 sm:$0xff]   ;;  %v1389_v49 = vld [vmem:[#allocation5 + $0x380] ss:$8 sps:$4 sm:$0xff]   ;;  %v1392_v52 = vld [vmem:[#allocation5 + $0x190] ss:$8 sps:$4 sm:$0xff]  }
  0x48   :  { %v1395_v53 = vld [vmem:[#allocation5 + $0x390] ss:$8 sps:$4 sm:$0xff]   ;;  %v1400_v54 = vld [vmem:[#allocation5 + $0x1a4] ss:$8 sps:$4 sm:$0xff]  }
  0x49   :  { %888 = vmatpush1.bf16.msra.mxu1 %v1294_v34  ;;  %v1560_v34 = vld [vmem:[#allocation2 + $0x8] sm:$0xff] }
  0x4a   :  { %974 = vmatpush1.bf16.msra.mxu0 %v1295_v35  ;;  %889 = vmatprep.subr.bf16.mxu1 %v1296_v36  ;;  %v1562_v35 = vld [vmem:[#allocation2 + $0x28] sm:$0xff]  ;;  %v1564_v36 = vld [vmem:[#allocation2 + $0x18] sm:$0xff] }
  0x4b   :  { %975 = vmatprep.subr.bf16.mxu0 %v1298_v37  ;;  %v1566_v37 = vld [vmem:[#allocation2 + $0x38] sm:$0xff]  ;;  %v1403_v55 = vld [vmem:[#allocation5 + $0x3a4] ss:$8 sps:$4 sm:$0xff]  }
  0x4d   :  { %890 = vmatpush1.bf16.msra.mxu1 %v1300_v38  ;;  %v1374_v38 = vld [vmem:[#allocation5 + $0x160] ss:$8 sps:$4 sm:$0xff]  }
  0x4e   :  { %976 = vmatpush1.bf16.msra.mxu0 %v1301_v39  ;;  %891 = vmatprep.subr.bf16.mxu1 %v1302_v40  ;;  %v1377_v39 = vld [vmem:[#allocation5 + $0x360] ss:$8 sps:$4 sm:$0xff]   ;;  %v1082_v40 = vcombine.high %v1560_v34, %v1562_v35 }
  0x4f   :  { %977 = vmatprep.subr.bf16.mxu0 %v1304_v41  ;;  %v1382_v41 = vld [vmem:[#allocation5 + $0x174] ss:$8 sps:$4 sm:$0xff]  }
  0x51   :  { %892 = vmatpush1.bf16.msra.mxu1 %v1306_v42  ;;  %v1385_v42 = vld [vmem:[#allocation5 + $0x374] ss:$8 sps:$4 sm:$0xff]  }
  0x52   :  { %978 = vmatpush1.bf16.msra.mxu0 %v1307_v43  ;;  %893 = vmatprep.subr.bf16.mxu1 %v1308_v44  ;;  %v1086_v43 = vcombine.high %v1564_v36, %v1566_v37  ;;  %v1380_v44 = vld [vmem:[#allocation5 + $0x170] ss:$8 sps:$4 sm:$0xff]  }
  0x53   :  { %979 = vmatprep.subr.bf16.mxu0 %v1310_v45  ;;  %v1383_v45 = vld [vmem:[#allocation5 + $0x370] ss:$8 sps:$4 sm:$0xff]  }
  0x55   :  { %894 = vmatpush1.bf16.msra.mxu1 %v1312_v46  ;;  %v1388_v46 = vld [vmem:[#allocation5 + $0x184] ss:$8 sps:$4 sm:$0xff]  }
  0x56   :  { %980 = vmatpush1.bf16.msra.mxu0 %v1313_v47  ;;  %895 = vmatprep.subr.bf16.mxu1 %v1314_v50  ;;  %v1391_v47 = vld [vmem:[#allocation5 + $0x384] ss:$8 sps:$4 sm:$0xff]   ;;  %v1394_v50 = vld [vmem:[#allocation5 + $0x194] ss:$8 sps:$4 sm:$0xff]  }
  0x57   :  { %981 = vmatprep.subr.bf16.mxu0 %v1316_v51  ;;  %v1397_v51 = vld [vmem:[#allocation5 + $0x394] ss:$8 sps:$4 sm:$0xff]  }
  0x59   :  { %896 = vmatpush1.bf16.msra.mxu1 %v1318_v56  ;;  %v1398_v56 = vld [vmem:[#allocation5 + $0x1a0] ss:$8 sps:$4 sm:$0xff]  }
  0x5a   :  { %982 = vmatpush1.bf16.msra.mxu0 %v1319_v57  ;;  %897 = vmatprep.subr.bf16.mxu1 %v1320_v58  ;;  %v1401_v57 = vld [vmem:[#allocation5 + $0x3a0] ss:$8 sps:$4 sm:$0xff]   ;;  %v1406_v58 = vld [vmem:[#allocation5 + $0x1b4] ss:$8 sps:$4 sm:$0xff]  }
  0x5b   :  { %983 = vmatprep.subr.bf16.mxu0 %v1322_v59  ;;  %v1409_v59 = vld [vmem:[#allocation5 + $0x3b4] ss:$8 sps:$4 sm:$0xff]  }
  0x5d   :  { %898 = vmatpush1.bf16.msra.mxu1 %v1324_v60  ;;  %v1404_v60 = vld [vmem:[#allocation5 + $0x1b0] ss:$8 sps:$4 sm:$0xff]  }
  0x5e   :  { %984 = vmatpush1.bf16.msra.mxu0 %v1325_v61  ;;  %899 = vmatprep.subr.bf16.mxu1 %v1326_v62  ;;  %v1407_v61 = vld [vmem:[#allocation5 + $0x3b0] ss:$8 sps:$4 sm:$0xff]   ;;  %v1412_v62 = vld [vmem:[#allocation5 + $0x1c4] ss:$8 sps:$4 sm:$0xff]  }
  0x5f   :  { %985 = vmatprep.subr.bf16.mxu0 %v1328_v63  ;;  %v1415_v63 = vld [vmem:[#allocation5 + $0x3c4] ss:$8 sps:$4 sm:$0xff]  }
  0x61   :  { %900 = vmatpush1.bf16.msra.mxu1 %v1330_v0  ;;  %v1410_v0 = vld [vmem:[#allocation5 + $0x1c0] ss:$8 sps:$4 sm:$0xff]  }
  0x62   :  { %986 = vmatpush1.bf16.msra.mxu0 %v1331_v1  ;;  %901 = vmatprep.subr.bf16.mxu1 %v1332_v2  ;;  %v1413_v1 = vld [vmem:[#allocation5 + $0x3c0] ss:$8 sps:$4 sm:$0xff]   ;;  %v1418_v2 = vld [vmem:[#allocation5 + $0x1d4] ss:$8 sps:$4 sm:$0xff]  }
  0x63   :  { %987 = vmatprep.subr.bf16.mxu0 %v1334_v3  ;;  %v1421_v3 = vld [vmem:[#allocation5 + $0x3d4] ss:$8 sps:$4 sm:$0xff]  }
  0x65   :  { %902 = vmatpush1.bf16.msra.mxu1 %v1336_v4  ;;  %v1416_v4 = vld [vmem:[#allocation5 + $0x1d0] ss:$8 sps:$4 sm:$0xff]  }
  0x66   :  { %988 = vmatpush1.bf16.msra.mxu0 %v1337_v5  ;;  %914 = vmatprep.subr.bf16.mxu1 %v1340_v6  ;;  %v1419_v5 = vld [vmem:[#allocation5 + $0x3d0] ss:$8 sps:$4 sm:$0xff]   ;;  %v1424_v6 = vld [vmem:[#allocation5 + $0x1e4] ss:$8 sps:$4 sm:$0xff]  }
  0x67   :  { %1000 = vmatprep.subr.bf16.mxu0 %v1343_v7  ;;  %v1427_v7 = vld [vmem:[#allocation5 + $0x3e4] ss:$8 sps:$4 sm:$0xff]  }
  0x68   :  { %904 = vmatmul.mubr.bf16.vlgmr.msra.gmra.mrb[0].mxu1 %v1079_v8  ;;  %v1422_v8 = vld [vmem:[#allocation5 + $0x1e0] ss:$8 sps:$4 sm:$0xff]  }
  0x69   :  { %990 = vmatmul.mubr.bf16.vlgmr.msra.gmra.mrb[0].mxu0 %v1083_v10  ;;  %915 = vmatpush1.bf16.msra.mxu1 %v1338_v9  ;;  %v1425_v9 = vld [vmem:[#allocation5 + $0x3e0] ss:$8 sps:$4 sm:$0xff]   ;;  %v1430_v10 = vld [vmem:[#allocation5 + $0x1f4] ss:$8 sps:$4 sm:$0xff]  }
  0x6a   :  { %1001 = vmatpush1.bf16.msra.mxu0 %v1341_v11  ;;  %916 = vmatprep.subr.bf16.mxu1 %v1346_v12  ;;  %v1433_v11 = vld [vmem:[#allocation5 + $0x3f4] ss:$8 sps:$4 sm:$0xff]   ;;  %v1428_v12 = vld [vmem:[#allocation5 + $0x1f0] ss:$8 sps:$4 sm:$0xff]  }
  0x6b   :  { %1002 = vmatprep.subr.bf16.mxu0 %v1349_v13  ;;  %946 = vmatprep.mubr.bf16.mxu1 %v1082_v40  ;;  %v1431_v13 = vld [vmem:[#allocation5 + $0x3f0] ss:$8 sps:$4 sm:$0xff]  }
  0x6c   :  { %1032 = vmatprep.mubr.bf16.mxu0 %v1086_v43 }
  0x6d   :  { %917 = vmatpush1.bf16.msra.mxu1 %v1344_v14  ;;  %v1081_v14 = vcombine.low %v1560_v34, %v1562_v35 }
  0x6e   :  { %1003 = vmatpush1.bf16.msra.mxu0 %v1347_v15  ;;  %918 = vmatprep.subr.bf16.mxu1 %v1352_v16  ;;  %v1085_v15 = vcombine.low %v1564_v36, %v1566_v37  ;;  %v181_v16 = vlaneseq }
  0x6f   :  { %1004 = vmatprep.subr.bf16.mxu0 %v1355_v17 }
  0x70   :  { %v182_v17 = vshrl.u32 %v181_v16, 7 }
  0x71   :  { %919 = vmatpush1.bf16.msra.mxu1 %v1350_v18 }
  0x72   :  { %1005 = vmatpush1.bf16.msra.mxu0 %v1353_v19  ;;  %920 = vmatprep.subr.bf16.mxu1 %v1358_v20  ;;  %v183_v18 = vsub.s32 0, %v182_v17  ;;  %v179_v19 = vld [vmem:[%s1596_s2] sm:$0x3]  ;;  %v187_v20 = vsub.s32 1, %v182_v17  ;;  %s1512_s2 = smov [#allocation7]  }
  0x73   :  { %1006 = vmatprep.subr.bf16.mxu0 %v1361_v21  ;;  %s1066_s13 = sshll.u32 %s1512_s2, 4  ;;  %s1067_s13 = int_to_ptr.vmem [resolvable:$true] %s1066_s13 }
  0x74   :  { %v184_v21 = vrot.slane %v179_v19, %v183_v18  ;;  %s1478_s14 = scalar_lea.vmem %s1067_s13, 256  ;;  %p1483_p3 = scmp.lt.s32.totalorder %s1067_s13, %s1067_s13 }
  0x75   :  { %921 = vmatpush1.bf16.msra.mxu1 %v1356_v22  ;;  %v188_v22 = vrot.slane %v179_v19, %v187_v20  ;;  %p1479_p2 = scmp.ne.s32.totalorder %s1067_s13, %s1478_s14  ;;  %p1484_p4 = scmp.lt.s32.totalorder %s1478_s14, %s1478_s14 }
  0x76   :  { %1007 = vmatpush1.bf16.msra.mxu0 %v1359_v23  ;;  %922 = vmatprep.subr.bf16.mxu1 %v1364_v24 }
  0x77   :  { %1008 = vmatprep.subr.bf16.mxu0 %v1367_v25  ;;  %p1485_p5 = por %p1484_p4, %p1483_p3 }
  0x79   :  { %923 = vmatpush1.bf16.msra.mxu1 %v1362_v26  ;;  %p1486_p6 = pnand %p1485_p5, %p1479_p2 }
  0x7a   :  { %1009 = vmatpush1.bf16.msra.mxu0 %v1365_v27  ;;  %924 = vmatprep.subr.bf16.mxu1 %v1370_v28 }
  0x7b   :  { %1010 = vmatprep.subr.bf16.mxu0 %v1373_v29 }
  0x7d   :  { %925 = vmatpush1.bf16.msra.mxu1 %v1368_v30 }
  0x7e   :  { %1011 = vmatpush1.bf16.msra.mxu0 %v1371_v31  ;;  %926 = vmatprep.subr.bf16.mxu1 %v1376_v32 }
  0x7f   :  { %1012 = vmatprep.subr.bf16.mxu0 %v1379_v33 }
  0x81   :  { %927 = vmatpush1.bf16.msra.mxu1 %v1374_v38 }
  0x82   :  { %1013 = vmatpush1.bf16.msra.mxu0 %v1377_v39  ;;  %928 = vmatprep.subr.bf16.mxu1 %v1382_v41 }
  0x83   :  { %1014 = vmatprep.subr.bf16.mxu0 %v1385_v42 }
  0x85   :  { %929 = vmatpush1.bf16.msra.mxu1 %v1380_v44 }
  0x86   :  { %1015 = vmatpush1.bf16.msra.mxu0 %v1383_v45  ;;  %930 = vmatprep.subr.bf16.mxu1 %v1388_v46 }
  0x87   :  { %1016 = vmatprep.subr.bf16.mxu0 %v1391_v47 }
  0x89   :  { %931 = vmatpush1.bf16.msra.mxu1 %v1386_v48 }
  0x8a   :  { %1017 = vmatpush1.bf16.msra.mxu0 %v1389_v49  ;;  %932 = vmatprep.subr.bf16.mxu1 %v1394_v50 }
  0x8b   :  { %1018 = vmatprep.subr.bf16.mxu0 %v1397_v51 }
  0x8d   :  { %933 = vmatpush1.bf16.msra.mxu1 %v1392_v52 }
  0x8e   :  { %1019 = vmatpush1.bf16.msra.mxu0 %v1395_v53  ;;  %934 = vmatprep.subr.bf16.mxu1 %v1400_v54 }
  0x8f   :  { %1020 = vmatprep.subr.bf16.mxu0 %v1403_v55 }
  0x91   :  { %935 = vmatpush1.bf16.msra.mxu1 %v1398_v56 }
  0x92   :  { %1021 = vmatpush1.bf16.msra.mxu0 %v1401_v57  ;;  %936 = vmatprep.subr.bf16.mxu1 %v1406_v58 }
  0x93   :  { %1022 = vmatprep.subr.bf16.mxu0 %v1409_v59 }
  0x95   :  { %937 = vmatpush1.bf16.msra.mxu1 %v1404_v60 }
  0x96   :  { %1023 = vmatpush1.bf16.msra.mxu0 %v1407_v61  ;;  %938 = vmatprep.subr.bf16.mxu1 %v1412_v62 }
  0x97   :  { %1024 = vmatprep.subr.bf16.mxu0 %v1415_v63 }
  0x99   :  { %939 = vmatpush1.bf16.msra.mxu1 %v1410_v0 }
  0x9a   :  { %1025 = vmatpush1.bf16.msra.mxu0 %v1413_v1  ;;  %940 = vmatprep.subr.bf16.mxu1 %v1418_v2 }
  0x9b   :  { %1026 = vmatprep.subr.bf16.mxu0 %v1421_v3 }
  0x9d   :  { %941 = vmatpush1.bf16.msra.mxu1 %v1416_v4 }
  0x9e   :  { %1027 = vmatpush1.bf16.msra.mxu0 %v1419_v5  ;;  %942 = vmatprep.subr.bf16.mxu1 %v1424_v6 }
  0x9f   :  { %1028 = vmatprep.subr.bf16.mxu0 %v1427_v7 }
  0xa1   :  { %943 = vmatpush1.bf16.msra.mxu1 %v1422_v8 }
  0xa2   :  { %1029 = vmatpush1.bf16.msra.mxu0 %v1425_v9  ;;  %944 = vmatprep.subr.bf16.mxu1 %v1430_v10 }
  0xa3   :  { %1030 = vmatprep.subr.bf16.mxu0 %v1433_v11 }
  0xa5   :  { %945 = vmatpush1.bf16.msra.mxu1 %v1428_v12 }
  0xa6   :  { %1031 = vmatpush1.bf16.msra.mxu0 %v1431_v13 }
  0xa8   :  { %947 = vmatmul.mubr.bf16.vlgmr.msra.gmra.mrb[0].mxu1 %v1081_v14 }
  0xa9   :  { %1033 = vmatmul.mubr.bf16.vlgmr.msra.gmra.mrb[0].mxu0 %v1085_v15 }
 0x17b   :  { %v948_v23 = vpop.f32.mrb[0].mxu1 }
 0x17c   :  { %v1034_v24 = vpop.f32.mrb[0].mxu0  ;;  %v1219_v25 = vadd.f32 %v948_v23, %v184_v21  ;;  %v950_v26 = vpop.f32.mrb[1].mxu1 }
 0x17d   :  { %v1036_v27 = vpop.f32.mrb[1].mxu0  ;;  %v1221_v28 = vadd.f32 %v950_v26, %v188_v22  ;;  %v952_v29 = vpop.f32.mrb[2].mxu1 }
 0x17e   :  { %v1038_v30 = vpop.f32.mrb[2].mxu0  ;;  %v1220_v31 = vadd.f32 %v1219_v25, %v1034_v24  ;;  %v1223_v32 = vadd.f32 %v952_v29, %v184_v21  ;;  %v954_v33 = vpop.f32.mrb[3].mxu1 }
 0x17f   :  { %v1040_v34 = vpop.f32.mrb[3].mxu0  ;;  %v1222_v35 = vadd.f32 %v1221_v28, %v1036_v27  ;;  %v1225_v36 = vadd.f32 %v954_v33, %v188_v22 }
 0x180   :  { %v1043_v37 = vmax.f32 %v1220_v31, 0.0  ;;  %v1224_v38 = vadd.f32 %v1223_v32, %v1038_v30 }
 0x181   :  { %v1044_v39 = vmax.f32 %v1222_v35, 0.0  ;;  %v1226_v40 = vadd.f32 %v1225_v36, %v1040_v34 }
 0x182   :  { %v1045_v41 = vmax.f32 %v1224_v38, 0.0 }
 0x183   :  { %v1217_v42 = vpack.c.bf16 %v1044_v39, %v1043_v37  ;;  %v1046_v43 = vmax.f32 %v1226_v40, 0.0 }
 0x185   :  { %1059 = vst [vmem:[#allocation7] sm:$0xff] %v1217_v42  ;;  %v1218_v44 = vpack.c.bf16 %v1046_v43, %v1045_v41 }
 0x187   :  { %1060 = vst [vmem:[#allocation7 + $0x8] sm:$0xff] %v1218_v44 }
 0x188   :  { %1489 = shalt.err (!%p1486_p6)
}
 0x189   :  { %s1490_s17 = scalar_lea.hbm %s1597_s3, 256 }
 0x18a   :  { %p1491_p7 = scmp.ne.s32.totalorder %s1597_s3, %s1490_s17  ;;  %p1494_p8 = scmp.lt.u32.totalorder %s1490_s17, %s1597_s3 }
 0x18c   :  { %p1496_p9 = pnand %p1494_p8, %p1491_p7 }
 0x18e   :  { %1499 = shalt.err (!%p1496_p9)
}
 0x18f   :  { %1072 = dma.vmem_to_hbm [thread:$0]  %s1067_s13, 256, %s1597_s3, [#allocation4], %s1510_s0, %s1510_s0, %s1511_s9  }
 0x190   :  { %1504 = dma.done.wait [#allocation4], 256  }
 0x191   :  { %1505 = vsyncadd [#allocation4], 4294967040 }
 0x192   :  { %1076 = vsyncpa [#allocation3], 1 }
 0x193   :  { %1077 = vsyncpa [#allocation6], 1 }
 0x194   :  { %1078 = vsyncpa [#allocation4], 1 }

</bundles_post_ra>
